<compile_context>
chip_gen: v6e
topology: v6e:2x2x1
jax: 0.10.0
libtpu: 0.0.40
codegen_flags: <defaults>
</compile_context>

<pallas_src>
import functools

import jax
import jax.numpy as jnp
from jax import lax
from jax.experimental import pallas as pl
from jax.experimental.pallas import tpu as pltpu


def _kd_loss_kernel(student_ref, teacher_ref, partial_ref, *,
                    rows_total, tile_rows, mask_rows):
    s = student_ref[...].astype(jnp.float32)
    t = teacher_ref[...].astype(jnp.float32)

    if mask_rows:
        # Ragged last tile: rows past the true batch read unspecified block
        # padding.  Mask the LOADED logits (not the products) to a finite 0 so
        # exp/log stay finite; zero rows contribute exactly 0 to the KL sum.
        row0 = pl.program_id(0) * tile_rows
        row_ids = row0 + lax.broadcasted_iota(jnp.int32, (tile_rows, 1), 0)
        valid = row_ids < rows_total
        s = jnp.where(valid, s, 0.0)
        t = jnp.where(valid, t, 0.0)

    # Student: stable softmax pieces (shared between prob and log-prob).
    s_max = jnp.max(s, axis=-1, keepdims=True)
    s_shift = s - s_max
    s_exp = jnp.exp(s_shift)
    s_sum = jnp.sum(s_exp, axis=-1, keepdims=True)

    # Teacher: only the shifted logits and the exp-sum are needed.
    t_max = jnp.max(t, axis=-1, keepdims=True)
    t_shift = t - t_max
    t_sum = jnp.sum(jnp.exp(t_shift), axis=-1, keepdims=True)

    # Row KL = sum_c softmax(s) * (log_softmax(s) - log_softmax(t))
    #        = sum_c s_exp*(s_shift - t_shift) / s_sum + (log t_sum - log s_sum)
    # (sum_c s_exp == s_sum folds the two log-sum broadcasts into per-row scalars.)
    num = jnp.sum(s_exp * (s_shift - t_shift), axis=-1, keepdims=True)
    # Per-row reciprocal touches only `tile_rows` scalars; keep it exact so the
    # result matches the f32 reference to tight tolerance.
    row_kl = num * pl.reciprocal(s_sum, approx=False) + (jnp.log(t_sum) - jnp.log(s_sum))

    # One f32 partial per grid step -> final reduction in the wrapper keeps the
    # batch grid axis "parallel" (megacore-shardable on v7x).
    partial_ref[0, 0] = jnp.sum(row_kl)


def _vmem_budget_bytes():
    """~75% of physical VMEM (48 MiB on v7x, 96 MiB on v5e/v6e); safe fallback."""
    cap = 64 * 1024 * 1024
    try:
        info = pltpu.get_tpu_info()
        cap = int(getattr(info, "vmem_capacity_bytes", cap))
    except Exception:
        pass
    return (cap * 3) // 4


def _choose_batch_tile(B, N, itemsize, vmem_budget_bytes, max_rows_per_tile=None):
    """Pick the batch tile (rows per grid step).

    Returns (tile_rows, num_tiles, mask_rows).
    """
    # Sublane multiple for the second-to-last block dim (8 f32 / 16 bf16 / 32 i8).
    sub = max(8, 32 // max(int(itemsize), 1))
    # VMEM per batch row in one grid step:
    #   inputs : 2 arrays x 2 pipeline buffers x N x itemsize
    #   body   : ~6 live (tb, N) f32 intermediates (s, t, s_shift, s_exp,
    #            t_shift, exp(t_shift)/product)
    bytes_per_row = N * (4 * itemsize + 6 * 4)
    tb = int(vmem_budget_bytes // max(bytes_per_row, 1))
    tb = (tb // sub) * sub
    tb = max(sub, min(4096, tb))
    if max_rows_per_tile is not None:
        cap = max(sub, (int(max_rows_per_tile) // sub) * sub)
        tb = min(tb, cap)

    if B <= tb:
        # Whole batch in a single block: a block equal to the full dim is
        # always legal (no sublane-multiple requirement) and needs no masking.
        return B, 1, False

    num_tiles = -(-B // tb)
    mask_rows = (B % tb) != 0
    return tb, num_tiles, mask_rows


def knowledge_distillation_loss(student_logit, teacher_logit, *, max_rows_per_tile=None):
    """KL(softmax(student) || softmax(teacher)), reduction='batchmean'.

    student_logit / teacher_logit: (B, N) arrays.  f32 or bf16 -- pass bf16
    straight from the producer to halve HBM traffic (compute is f32 in-kernel).
    `max_rows_per_tile` is an optional cap on the batch tile (mainly for tests).
    """
    assert student_logit.shape == teacher_logit.shape
    assert student_logit.ndim == 2
    B, N = student_logit.shape
    itemsize = jnp.dtype(student_logit.dtype).itemsize

    vmem_budget = _vmem_budget_bytes()
    tb, num_tiles, mask_rows = _choose_batch_tile(
        B, N, itemsize, vmem_budget, max_rows_per_tile)

    cost = pl.CostEstimate(
        flops=10 * B * N,                      # subs/muls/reductions per element
        transcendentals=2 * B * N,             # exp(student) + exp(teacher)
        bytes_accessed=2 * B * N * itemsize + 4 * num_tiles,
    )

    kernel = functools.partial(
        _kd_loss_kernel, rows_total=B, tile_rows=tb, mask_rows=mask_rows)

    partials = pl.pallas_call(
        kernel,
        out_shape=jax.ShapeDtypeStruct((num_tiles, 1), jnp.float32),
        grid_spec=pltpu.PrefetchScalarGridSpec(
            num_scalar_prefetch=0,
            grid=(num_tiles,),
            in_specs=[
                pl.BlockSpec((tb, N), lambda i: (i, 0)),
                pl.BlockSpec((tb, N), lambda i: (i, 0)),
            ],
            out_specs=pl.BlockSpec(
                (1, 1), lambda i: (i, 0), memory_space=pltpu.SMEM),
        ),
        compiler_params=pltpu.CompilerParams(
            dimension_semantics=("parallel",),
            vmem_limit_bytes=vmem_budget,
        ),
        cost_estimate=cost,
    )(student_logit, teacher_logit)

    # Final reduction + 'batchmean' normalization (by the true batch size).
    return jnp.sum(partials) / jnp.float32(B)


def _reference_loss(student_logit, teacher_logit):
    """Pure-JAX reference: kl_div(log_softmax(t), softmax(s), 'batchmean')."""
    s = student_logit.astype(jnp.float32)
    t = teacher_logit.astype(jnp.float32)
    s_prob = jax.nn.softmax(s, axis=-1)
    s_logprob = jax.nn.log_softmax(s, axis=-1)
    t_logprob = jax.nn.log_softmax(t, axis=-1)
    return jnp.sum(s_prob * (s_logprob - t_logprob)) / student_logit.shape[0]


if __name__ == "__main__":
    key = jax.random.PRNGKey(0)
    k1, k2, k3, k4, k5, k6 = jax.random.split(key, 6)

    # Case 1: small, lane-aligned shape, single whole-batch tile.
    s1 = jax.random.normal(k1, (8, 128), dtype=jnp.float32)
    t1 = jax.random.normal(k2, (8, 128), dtype=jnp.float32)
    loss1 = jax.block_until_ready(knowledge_distillation_loss(s1, t1))
    ref1 = jax.block_until_ready(_reference_loss(s1, t1))
    assert jnp.allclose(loss1, ref1, rtol=1e-5, atol=1e-5), (loss1, ref1)

    # Case 2: batch not a multiple of 8, whole-batch (full-dim) block path.
    s2 = jax.random.normal(k3, (10, 384), dtype=jnp.float32)
    t2 = jax.random.normal(k4, (10, 384), dtype=jnp.float32)
    loss2 = jax.block_until_ready(knowledge_distillation_loss(s2, t2))
    ref2 = jax.block_until_ready(_reference_loss(s2, t2))
    assert jnp.allclose(loss2, ref2, rtol=1e-5, atol=1e-5), (loss2, ref2)

    # Case 3: force the tiled grid + ragged-last-tile in-kernel masking path.
    s3 = jax.random.normal(k5, (20, 256), dtype=jnp.float32)
    t3 = jax.random.normal(k6, (20, 256), dtype=jnp.float32)
    loss3 = jax.block_until_ready(
        knowledge_distillation_loss(s3, t3, max_rows_per_tile=8))
    ref3 = jax.block_until_ready(_reference_loss(s3, t3))
    assert jnp.allclose(loss3, ref3, rtol=1e-5, atol=1e-5), (loss3, ref3)

    # Case 4: bf16 inputs (producer-side cast), tiled + masked, f32 in-kernel math.
    s4 = s3.astype(jnp.bfloat16)
    t4 = t3.astype(jnp.bfloat16)
    loss4 = jax.block_until_ready(
        knowledge_distillation_loss(s4, t4, max_rows_per_tile=16))
    ref4 = jax.block_until_ready(_reference_loss(s4, t4))
    assert jnp.allclose(loss4, ref4, rtol=1e-4, atol=1e-4), (loss4, ref4)

    print("KERNEL_OK")
</pallas_src>

<mosaic_0001>
module attributes {stable_mosaic.version = 11 : i64} {
  func.func @_kd_loss_kernel(%arg0: i32, %arg1: memref<8x128xf32, #tpu.memory_space<vmem>>, %arg2: memref<8x128xf32, #tpu.memory_space<vmem>>, %arg3: memref<1x1xf32, #tpu.memory_space<smem>>) attributes {dimension_semantics = [#tpu.dimension_semantics<parallel>], iteration_bounds = array<i64: 1>, scalar_prefetch = 0 : i64, scratch_operands = 0 : i64, tpu.core_type = #tpu.core_type<tc>, window_params = [{transform_indices = @transform_0, window_bounds = array<i64: 8, 128>}, {transform_indices = @transform_1, window_bounds = array<i64: 8, 128>}, {transform_indices = @transform_2, window_bounds = array<i64: 1, 1>}]} {
    %c0 = arith.constant 0 : index
    %c0_0 = arith.constant 0 : index
    %0 = vector.load %arg1[%c0, %c0_0] : memref<8x128xf32, #tpu.memory_space<vmem>>, vector<8x128xf32>
    %c0_1 = arith.constant 0 : index
    %c0_2 = arith.constant 0 : index
    %1 = vector.load %arg2[%c0_1, %c0_2] : memref<8x128xf32, #tpu.memory_space<vmem>>, vector<8x128xf32>
    %cst = arith.constant dense<0xFF800000> : vector<8xf32>
    %2 = vector.multi_reduction <maximumf>, %0, %cst [1] : vector<8x128xf32> to vector<8xf32>
    %3 = vector.shape_cast %2 : vector<8xf32> to vector<8x1xf32>
    %4 = vector.broadcast %3 : vector<8x1xf32> to vector<8x128xf32>
    %5 = arith.subf %0, %4 : vector<8x128xf32>
    %6 = math.exp %5 : vector<8x128xf32>
    %cst_3 = arith.constant dense<0.000000e+00> : vector<8xf32>
    %7 = vector.multi_reduction <add>, %6, %cst_3 [1] : vector<8x128xf32> to vector<8xf32>
    %8 = vector.shape_cast %7 : vector<8xf32> to vector<8x1xf32>
    %cst_4 = arith.constant dense<0xFF800000> : vector<8xf32>
    %9 = vector.multi_reduction <maximumf>, %1, %cst_4 [1] : vector<8x128xf32> to vector<8xf32>
    %10 = vector.shape_cast %9 : vector<8xf32> to vector<8x1xf32>
    %11 = vector.broadcast %10 : vector<8x1xf32> to vector<8x128xf32>
    %12 = arith.subf %1, %11 : vector<8x128xf32>
    %13 = math.exp %12 : vector<8x128xf32>
    %cst_5 = arith.constant dense<0.000000e+00> : vector<8xf32>
    %14 = vector.multi_reduction <add>, %13, %cst_5 [1] : vector<8x128xf32> to vector<8xf32>
    %15 = vector.shape_cast %14 : vector<8xf32> to vector<8x1xf32>
    %16 = arith.subf %5, %12 : vector<8x128xf32>
    %17 = arith.mulf %6, %16 : vector<8x128xf32>
    %cst_6 = arith.constant dense<0.000000e+00> : vector<8xf32>
    %18 = vector.multi_reduction <add>, %17, %cst_6 [1] : vector<8x128xf32> to vector<8xf32>
    %19 = vector.shape_cast %18 : vector<8xf32> to vector<8x1xf32>
    %20 = tpu.reciprocal %8 : vector<8x1xf32> -> vector<8x1xf32>
    %21 = arith.mulf %19, %20 : vector<8x1xf32>
    %22 = math.log %15 : vector<8x1xf32>
    %23 = math.log %8 : vector<8x1xf32>
    %24 = arith.subf %22, %23 : vector<8x1xf32>
    %25 = arith.addf %21, %24 : vector<8x1xf32>
    %26 = vector.shape_cast %25 : vector<8x1xf32> to vector<1x8x1xf32>
    %cst_7 = arith.constant dense<0.000000e+00> : vector<1xf32>
    %27 = vector.multi_reduction <add>, %26, %cst_7 [1, 2] : vector<1x8x1xf32> to vector<1xf32>
    %28 = vector.shape_cast %27 : vector<1xf32> to vector<1x1x1xf32>
    %29 = vector.extract %28[0, 0, 0] : f32 from vector<1x1x1xf32>
    %c0_8 = arith.constant 0 : index
    %c0_9 = arith.constant 0 : index
    %30 = memref.load %arg3[%c0_8, %c0_9] : memref<1x1xf32, #tpu.memory_space<smem>>
    memref.store %29, %arg3[%c0_8, %c0_9] : memref<1x1xf32, #tpu.memory_space<smem>>
    return
  }
  func.func @transform_0(%arg0: i32) -> (i32, i32) {
    %c0_i32 = arith.constant 0 : i32
    %c0_i32_0 = arith.constant 0 : i32
    return %arg0, %c0_i32 : i32, i32
  }
  func.func @transform_1(%arg0: i32) -> (i32, i32) {
    %c0_i32 = arith.constant 0 : i32
    %c0_i32_0 = arith.constant 0 : i32
    return %arg0, %c0_i32 : i32, i32
  }
  func.func @transform_2(%arg0: i32) -> (i32, i32) {
    %c0_i32 = arith.constant 0 : i32
    %c0_i32_0 = arith.constant 0 : i32
    return %arg0, %c0_i32 : i32, i32
  }
}

</mosaic_0001>

<bundles_post_ra>
// kernel: tpu_custom_call.1
= control target key start
LH: loop header
LB: loop body
LE: loop exit
PB: predicated region body
PF: predicated region fallthrough
CT: control target
= control target key end

     0   :  { %7 = vsyncpa [#allocation3], 0  ;;  %s188_s0 = inlined_call_operand.hbm [shape: f32[8,128], index: 0, kind: input, shape index: {}]   ;;  %s189_s1 = inlined_call_operand.hbm [shape: f32[8,128], index: 1, kind: input, shape index: {}]   ;;  %s190_s2 = inlined_call_operand.hbm [shape: f32[1,1], index: 2, kind: output, shape index: {}]  }
   0x1   :  { %8 = vsyncpa [#allocation6], 0 }
   0x2   :  { %9 = vsyncpa [#allocation4], 0  ;;  %s161_s9 = smov [#allocation2]   ;;  %s162_s11 = smov [#allocation5]  }
   0x3   :  { %s16_s10 = sshll.u32 %s161_s9, 4  ;;  %s26_s12 = sshll.u32 %s162_s11, 4  ;;  %s17_s10 = int_to_ptr.vmem [resolvable:$true] %s16_s10  ;;  %s27_s12 = int_to_ptr.vmem [resolvable:$true] %s26_s12 }
   0x4   :  { %s115_s13 = scalar_lea.vmem %s17_s10, 128  ;;  %p120_p1 = scmp.lt.s32.totalorder %s17_s10, %s17_s10 }
   0x5   :  { %p116_p0 = scmp.ne.s32.totalorder %s17_s10, %s115_s13  ;;  %p121_p2 = scmp.lt.s32.totalorder %s115_s13, %s115_s13 }
   0x7   :  { %p122_p3 = por %p121_p2, %p120_p1 }
   0x9   :  { %p123_p4 = pnand %p122_p3, %p116_p0 }
   0xb   :  { %126 = shalt.err (!%p123_p4)
}
   0xc   :  { %19 = dma.hbm_to_vmem [thread:$0]  %s188_s0, 128, %s17_s10, [#allocation3]  }
   0xd   :  { %s135_s16 = scalar_lea.vmem %s27_s12, 128  ;;  %p140_p6 = scmp.lt.s32.totalorder %s27_s12, %s27_s12 }
   0xe   :  { %p136_p5 = scmp.ne.s32.totalorder %s27_s12, %s135_s16  ;;  %p141_p7 = scmp.lt.s32.totalorder %s135_s16, %s135_s16 }
  0x10   :  { %p142_p8 = por %p141_p7, %p140_p6 }
  0x12   :  { %p143_p9 = pnand %p142_p8, %p136_p5 }
  0x14   :  { %146 = shalt.err (!%p143_p9)
}
  0x15   :  { %29 = dma.hbm_to_vmem [thread:$0]  %s189_s1, 128, %s27_s12, [#allocation6]  }
  0x16   :  { %155 = dma.done.wait [#allocation3], 128  }
  0x17   :  { %156 = vsyncadd [#allocation3], 4294967168 }
  0x18   :  { %157 = dma.done.wait [#allocation6], 128  }
  0x19   :  { %158 = vsyncadd [#allocation6], 4294967168  ;;  %v36_v0 = vld [vmem:[#allocation2] sm:$0xff]  ;;  %v37_v1 = vld [vmem:[#allocation5] sm:$0xff]  ;;  %vm64_vm0 = vcmask 7168   ;;  %s163_s1 = smov [#allocation7]  }
  0x1a   :  { %38 = vmax.xlane.f32.xlu0 %v36_v0 }
  0x1e   :  { %45 = vmax.xlane.f32.xlu0 %v37_v1 }
  0xa3   :  { %v39_v2 = vpop.xlane.xlu0 %38 }
  0xa4   :  { %v40_v3 = vsub.f32 %v36_v0, %v39_v2 }
  0xa6   :  { %v41_v4 = vmul.f32 1.442695, %v40_v3 }
  0xa7   :  { %v46_v5 = vpop.xlane.xlu0 %45 }
  0xa8   :  { %97 = vpow2.f32 %v41_v4  ;;  %v47_v6 = vsub.f32 %v37_v1, %v46_v5 }
  0xaa   :  { %v48_v7 = vmul.f32 1.442695, %v47_v6  ;;  %v52_v8 = vsub.f32 %v40_v3, %v47_v6 }
  0xac   :  { %99 = vpow2.f32 %v48_v7 }
  0xb5   :  { %v98_v9 = vpop.eup %97 }
  0xb6   :  { %43 = vadd.xlane.f32.xlu1 %v98_v9  ;;  %v53_v10 = vmul.f32 %v98_v9, %v52_v8 }
  0xb8   :  { %54 = vadd.xlane.f32.xlu0 %v53_v10 }
  0xb9   :  { %v100_v11 = vpop.eup %99 }
  0xba   :  { %50 = vadd.xlane.f32.xlu1 %v100_v11 }
 0x13f   :  { %v44_v12 = vpop.xlane.xlu1 %43 }
 0x140   :  { %101 = vlog2.f32 %v44_v12 }
 0x141   :  { %103 = vrcp.f32 %v44_v12  ;;  %v55_v19 = vpop.xlane.xlu0 %54 }
 0x143   :  { %v51_v13 = vpop.xlane.xlu1 %50 }
 0x144   :  { %105 = vlog2.f32 %v51_v13 }
 0x14d   :  { %v102_v14 = vpop.eup %101 }
 0x14e   :  { %v104_v15 = vpop.eup %103  ;;  %v61_v17 = vmul.f32 0.6931472, %v102_v14 }
 0x14f   :  { %v57_v20 = vmul.f32 %v104_v15, %v55_v19 }
 0x151   :  { %v106_v16 = vpop.eup %105 }
 0x152   :  { %v59_v18 = vmul.f32 0.6931472, %v106_v16 }
 0x154   :  { %v62_v21 = vsub.f32 %v59_v18, %v61_v17 }
 0x156   :  { %v63_v22 = vadd.f32 %v62_v21, %v57_v20 }
 0x158   :  { %v65_v23 = vsel %vm64_vm0, %v63_v22, 0.0 }
 0x159   :  { %66 = vadd.xlane.f32.xlu1 %v65_v23 }
 0x1e2   :  { %v67_v24 = vpop.xlane.xlu1 %66 }
 0x1e3   :  { %v68_v25 = vrot.slane %v67_v24, 4 }
 0x1e5   :  { %v69_v26 = vadd.f32 %v68_v25, %v67_v24 }
 0x1e7   :  { %v70_v27 = vrot.slane %v69_v26, 2 }
 0x1e9   :  { %v71_v28 = vadd.f32 %v70_v27, %v69_v26 }
 0x1eb   :  { %v72_v29 = vrot.slane %v71_v28, 1 }
 0x1ed   :  { %v73_v30 = vadd.f32 %v72_v29, %v71_v28 }
 0x1ef   :  { %92 = vpush %v73_v30 }
 0x220   :  { %s93_s0 = spop %92 }
 0x221   :  { %76 = sst [smem:[#allocation7]] %s93_s0 }
 0x222   :  { %84 = dma.smem_to_hbm %s163_s1, 16, %s190_s2, [#allocation4]  }
 0x223   :  { %159 = dma.done.wait [#allocation4], 16  }
 0x224   :  { %160 = vsyncadd [#allocation4], 4294967280 }
 0x225   :  { %88 = sfence }
 0x226   :  { %89 = vsyncpa [#allocation3], 1 }
 0x227   :  { %90 = vsyncpa [#allocation6], 1 }
 0x228   :  { %91 = vsyncpa [#allocation4], 1 }

</bundles_post_ra>
